<compile_context>
chip_gen: v7x
topology: tpu7x:2x2x1
jax: 0.10.0
libtpu: 0.0.40
codegen_flags: <defaults>
</compile_context>

<pallas_src>
import functools

import jax
import jax.numpy as jnp
from jax.experimental import pallas as pl
from jax.experimental.pallas import tpu as pltpu

_MIB = 1 << 20


def _round_up(n, m):
    return ((n + m - 1) // m) * m


def _vmem_capacity_bytes():
    # Generation-aware: v5e/v6e have 128 MiB VMEM per core, v7x only 64 MiB/TC.
    try:
        return int(pltpu.get_tpu_info().vmem_capacity_bytes)
    except Exception:
        return 64 * _MIB  # conservative fallback (v7x per-TC VMEM)


# ---------------------------------------------------------------------------
# Kernels
# ---------------------------------------------------------------------------

def _cg_resident_kernel(x_ref, w_ref, b_ref, o_ref, *, mxu_dtype):
    """Full weight resident in VMEM; one batch tile per grid step."""
    x = x_ref[...]
    g = jnp.dot(x.astype(mxu_dtype), w_ref[...].astype(mxu_dtype),
                preferred_element_type=jnp.float32)
    g = g + b_ref[...].astype(jnp.float32)
    # glu(cat([x, x1], 1), 1) == x * sigmoid(x1); gating math kept in f32.
    o_ref[...] = (x.astype(jnp.float32) * jax.nn.sigmoid(g)).astype(o_ref.dtype)


def _cg_stream_kernel(x_ref, w_ref, b_ref, o_ref, *, tn, mxu_dtype):
    """Weight streamed as (D, tn) output-column panels; x tile resident over n."""
    n = pl.program_id(1)
    x = x_ref[...]
    g = jnp.dot(x.astype(mxu_dtype), w_ref[...].astype(mxu_dtype),
                preferred_element_type=jnp.float32)
    g = g + b_ref[...].astype(jnp.float32)
    start = pl.multiple_of(n * tn, tn)                 # tn is a multiple of 128
    x_panel = x_ref[:, pl.ds(start, tn)]               # gate with matching columns
    o_ref[...] = (x_panel.astype(jnp.float32) * jax.nn.sigmoid(g)).astype(o_ref.dtype)


# ---------------------------------------------------------------------------
# Wrapper
# ---------------------------------------------------------------------------

def context_gating(x, w, b, *, block_b=None, mxu_dtype=None, _force_stream_tn=None):
    """Context_Gating forward: x * sigmoid(x @ w + b).

    x: [B, D]; w: [D, D] in [in, out] layout (transposed from PyTorch [out, in]);
    b: [D].  mxu_dtype=jnp.bfloat16 feeds the MXU bf16 inputs (f32 accumulation,
    f32 gating) -- the fast path on v6e/v7x when ~1e-2 accuracy is acceptable.
    """
    B, D = x.shape
    assert w.shape == (D, D) and b.shape == (D,)
    assert w.dtype == x.dtype, "x/w dtype mismatch would silently change matmul behavior"

    if mxu_dtype is None:
        mxu_dtype = x.dtype
    mxu_dtype = jnp.dtype(mxu_dtype)

    itemsize = jnp.dtype(x.dtype).itemsize
    w_itemsize = mxu_dtype.itemsize

    # Parameter prep. TODO(synk): in a real model, hoist this cast/reshape of
    # the (static) parameters out of the per-call hot path.
    w2 = w if w.dtype == mxu_dtype else w.astype(mxu_dtype)
    b2 = b.astype(jnp.float32).reshape(1, D)

    capacity = _vmem_capacity_bytes()
    budget = max(capacity - 8 * _MIB, 16 * _MIB)       # headroom below physical VMEM

    # Keep the (single-buffered) weight resident if it fits comfortably;
    # otherwise stream it as (D, tn) output-column panels.
    w_bytes = D * D * w_itemsize
    stream = _force_stream_tn is not None or (w_bytes > budget // 2 and D % 128 == 0)
    # TODO(synk): huge D that is not a multiple of 128 still uses the resident
    # path; pad the weight once (outside the hot path) to enable streaming there.

    if stream:
        if _force_stream_tn is not None:
            tn = int(_force_stream_tn)
            assert D % tn == 0 and tn % 128 == 0
        else:
            tn = next(t for t in (512, 256, 128) if D % t == 0)
        avail = max(budget - 2 * D * tn * w_itemsize - 2 * _MIB, 2 * _MIB)
        per_row = (2 * D + 2 * tn) * itemsize          # 2x x tile + 2x out panel
    else:
        avail = max(budget - w_bytes - 2 * _MIB, 2 * _MIB)
        per_row = 4 * D * itemsize                     # 2x x tile + 2x out tile

    # Batch tile: as large as VMEM headroom allows (amortizes grid-step overhead
    # and the weight-stationary matmul); multiple of 8 sublanes.
    cap_rows = max(avail // per_row, 8)
    tb = 8
    for cand in (1024, 512, 256, 128, 64, 32, 16, 8):
        if cand <= cap_rows:
            tb = cand
            break
    tb = min(tb, _round_up(B, 8))
    if block_b is not None:
        tb = max(8, min(tb, _round_up(block_b, 8)))
    # Megacore (v7x): keep >= 2 batch tiles when there is enough batch to split.
    if B > 256 and pl.cdiv(B, tb) < 2:
        tb = _round_up(pl.cdiv(B, 2), 128)

    # VMEM limit from actual buffering (counting a worst-case double-buffered
    # weight in case the Buffered(1) fallback triggers), capped at the
    # per-generation physical budget.
    need = 4 * tb * D * itemsize + 2 * w_bytes + 8 * D * 4
    vmem_limit = int(min(budget, max(32 * _MIB, need + 4 * _MIB)))

    cost = pl.CostEstimate(
        flops=2 * B * D * D,
        transcendentals=B * D,
        bytes_accessed=2 * B * D * itemsize + w_bytes + D * 4,
    )
    out_shape = jax.ShapeDtypeStruct((B, D), x.dtype)

    if stream:
        kernel = functools.partial(_cg_stream_kernel, tn=tn, mxu_dtype=mxu_dtype)
        grid_spec = pltpu.PrefetchScalarGridSpec(
            num_scalar_prefetch=0,
            grid=(pl.cdiv(B, tb), D // tn),
            in_specs=[
                pl.BlockSpec((tb, D), lambda i, n: (i, 0)),   # x: resident across n
                pl.BlockSpec((D, tn), lambda i, n: (0, n)),   # W: streamed panels
                pl.BlockSpec((1, tn), lambda i, n: (0, n)),   # bias panel
            ],
            out_specs=pl.BlockSpec((tb, tn), lambda i, n: (i, n)),
        )
        params = pltpu.CompilerParams(
            dimension_semantics=("parallel", "arbitrary"),
            vmem_limit_bytes=vmem_limit,
        )
        return pl.pallas_call(kernel, out_shape=out_shape, grid_spec=grid_spec,
                              compiler_params=params, cost_estimate=cost)(x, w2, b2)

    kernel = functools.partial(_cg_resident_kernel, mxu_dtype=mxu_dtype)
    params = pltpu.CompilerParams(
        dimension_semantics=("parallel",),
        vmem_limit_bytes=vmem_limit,
    )

    def _call(single_buffer_weight):
        wmode = {"pipeline_mode": pl.Buffered(1)} if single_buffer_weight else {}
        grid_spec = pltpu.PrefetchScalarGridSpec(
            num_scalar_prefetch=0,
            grid=(pl.cdiv(B, tb),),
            in_specs=[
                pl.BlockSpec((tb, D), lambda i: (i, 0)),          # x: streamed per tile
                pl.BlockSpec((D, D), lambda i: (0, 0), **wmode),  # W: VMEM-resident
                pl.BlockSpec((1, D), lambda i: (0, 0), **wmode),  # bias: VMEM-resident
            ],
            out_specs=pl.BlockSpec((tb, D), lambda i: (i, 0)),
        )
        return pl.pallas_call(kernel, out_shape=out_shape, grid_spec=grid_spec,
                              compiler_params=params, cost_estimate=cost)(x, w2, b2)

    try:
        return _call(True)
    except Exception:
        # TODO(synk): pl.Buffered(1) rejected by this JAX build; fall back to the
        # default double-buffered (still correct) resident weight.
        return _call(False)


def _reference(x, w, b):
    return x * jax.nn.sigmoid(x @ w + b)


if __name__ == "__main__":
    key = jax.random.PRNGKey(0)
    k_x, k_w, k_b, k_x2, k_w2, k_b2 = jax.random.split(key, 6)

    # 1) Small shape consistent with Context_Gating(dimension=32):
    #    resident-weight path, feature dim deliberately left unpadded (<128).
    B, D = 8, 32
    x = jax.random.normal(k_x, (B, D), dtype=jnp.float32)
    w = jax.random.normal(k_w, (D, D), dtype=jnp.float32) * (1.0 / D) ** 0.5
    b = jax.random.normal(k_b, (D,), dtype=jnp.float32) * 0.1
    out = jax.block_until_ready(context_gating(x, w, b))
    assert out.shape == (B, D)
    assert jnp.allclose(out, _reference(x, w, b), atol=1e-5, rtol=1e-5)

    # 2) Exercise the weight-streaming (large-D) path on a small shape.
    B2, D2 = 64, 256
    x2 = jax.random.normal(k_x2, (B2, D2), dtype=jnp.float32)
    w2 = jax.random.normal(k_w2, (D2, D2), dtype=jnp.float32) * (1.0 / D2) ** 0.5
    b2 = jax.random.normal(k_b2, (D2,), dtype=jnp.float32) * 0.1
    out2 = jax.block_until_ready(context_gating(x2, w2, b2, _force_stream_tn=128))
    assert jnp.allclose(out2, _reference(x2, w2, b2), atol=1e-5, rtol=1e-5)

    # 3) bf16 MXU inputs (v6e/v7x fast path); f32 accumulate + f32 gating.
    out3 = jax.block_until_ready(context_gating(x2, w2, b2, mxu_dtype=jnp.bfloat16))
    assert jnp.allclose(out3, _reference(x2, w2, b2), atol=3e-2, rtol=3e-2)

    print("KERNEL_OK")
</pallas_src>

<mosaic_0001>
module attributes {stable_mosaic.version = 11 : i64} {
  func.func @_cg_resident_kernel(%arg0: i32, %arg1: memref<8x32xf32, #tpu.memory_space<vmem>>, %arg2: memref<32x32xf32, #tpu.memory_space<vmem>>, %arg3: memref<1x32xf32, #tpu.memory_space<vmem>>, %arg4: memref<8x32xf32, #tpu.memory_space<vmem>>) attributes {dimension_semantics = [#tpu.dimension_semantics<parallel>], iteration_bounds = array<i64: 1>, scalar_prefetch = 0 : i64, scratch_operands = 0 : i64, tpu.core_type = #tpu.core_type<tc>, window_params = [{transform_indices = @transform_0, window_bounds = array<i64: 8, 32>}, {pipeline_mode = #tpu.pipeline_mode<synchronous>, transform_indices = @transform_1, window_bounds = array<i64: 32, 32>}, {pipeline_mode = #tpu.pipeline_mode<synchronous>, transform_indices = @transform_2, window_bounds = array<i64: 1, 32>}, {transform_indices = @transform_3, window_bounds = array<i64: 8, 32>}]} {
    %c0 = arith.constant 0 : index
    %c0_0 = arith.constant 0 : index
    %0 = vector.load %arg1[%c0, %c0_0] : memref<8x32xf32, #tpu.memory_space<vmem>>, vector<8x32xf32>
    %c0_1 = arith.constant 0 : index
    %c0_2 = arith.constant 0 : index
    %1 = vector.load %arg2[%c0_1, %c0_2] : memref<32x32xf32, #tpu.memory_space<vmem>>, vector<32x32xf32>
    %cst = arith.constant dense<0.000000e+00> : vector<8x32xf32>
    %2 = tpu.matmul %0, %1, %cst {dimension_numbers = #tpu.dot_dimension_numbers<[1], [0], [0], [1], [0, 0, 1, 1], [], []>} : vector<8x32xf32>, vector<32x32xf32>, vector<8x32xf32> -> vector<8x32xf32>
    %c0_3 = arith.constant 0 : index
    %c0_4 = arith.constant 0 : index
    %3 = vector.load %arg3[%c0_3, %c0_4] : memref<1x32xf32, #tpu.memory_space<vmem>>, vector<1x32xf32>
    %4 = vector.broadcast %3 : vector<1x32xf32> to vector<8x32xf32>
    %5 = arith.addf %2, %4 : vector<8x32xf32>
    %6 = arith.negf %5 : vector<8x32xf32>
    %7 = math.exp %6 : vector<8x32xf32>
    %cst_5 = arith.constant 1.000000e+00 : f32
    %8 = vector.broadcast %cst_5 : f32 to vector<8x32xf32>
    %9 = arith.addf %8, %7 : vector<8x32xf32>
    %10 = arith.divf %8, %9 : vector<8x32xf32>
    %11 = arith.mulf %0, %10 : vector<8x32xf32>
    %c0_6 = arith.constant 0 : index
    %c0_7 = arith.constant 0 : index
    %12 = vector.load %arg4[%c0_6, %c0_7] : memref<8x32xf32, #tpu.memory_space<vmem>>, vector<8x32xf32>
    tpu.vector_store %arg4[%c0_6, %c0_7], %11 {strides = array<i32>} : memref<8x32xf32, #tpu.memory_space<vmem>>, vector<8x32xf32>,
    return
  }
  func.func @transform_0(%arg0: i32) -> (i32, i32) {
    %c0_i32 = arith.constant 0 : i32
    %c0_i32_0 = arith.constant 0 : i32
    return %arg0, %c0_i32 : i32, i32
  }
  func.func @transform_1(%arg0: i32) -> (i32, i32) {
    %c0_i32 = arith.constant 0 : i32
    %c0_i32_0 = arith.constant 0 : i32
    %c0_i32_1 = arith.constant 0 : i32
    return %c0_i32, %c0_i32_0 : i32, i32
  }
  func.func @transform_2(%arg0: i32) -> (i32, i32) {
    %c0_i32 = arith.constant 0 : i32
    %c0_i32_0 = arith.constant 0 : i32
    %c0_i32_1 = arith.constant 0 : i32
    return %c0_i32, %c0_i32_0 : i32, i32
  }
  func.func @transform_3(%arg0: i32) -> (i32, i32) {
    %c0_i32 = arith.constant 0 : i32
    %c0_i32_0 = arith.constant 0 : i32
    return %arg0, %c0_i32 : i32, i32
  }
}

module attributes {stable_mosaic.version = 11 : i64} {
  func.func @_cg_resident_kernel(%arg0: i32, %arg1: memref<8x32xf32, #tpu.memory_space<vmem>>, %arg2: memref<32x32xf32, #tpu.memory_space<vmem>>, %arg3: memref<1x32xf32, #tpu.memory_space<vmem>>, %arg4: memref<8x32xf32, #tpu.memory_space<vmem>>) attributes {dimension_semantics = [#tpu.dimension_semantics<parallel>], iteration_bounds = array<i64: 1>, scalar_prefetch = 0 : i64, scratch_operands = 0 : i64, tpu.core_type = #tpu.core_type<tc>, window_params = [{transform_indices = @transform_0, window_bounds = array<i64: 8, 32>}, {pipeline_mode = #tpu.pipeline_mode<synchronous>, transform_indices = @transform_1, window_bounds = array<i64: 32, 32>}, {pipeline_mode = #tpu.pipeline_mode<synchronous>, transform_indices = @transform_2, window_bounds = array<i64: 1, 32>}, {transform_indices = @transform_3, window_bounds = array<i64: 8, 32>}]} {
    %c0 = arith.constant 0 : index
    %c0_0 = arith.constant 0 : index
    %0 = vector.load %arg1[%c0, %c0_0] : memref<8x32xf32, #tpu.memory_space<vmem>>, vector<8x32xf32>
    %c0_1 = arith.constant 0 : index
    %c0_2 = arith.constant 0 : index
    %1 = vector.load %arg2[%c0_1, %c0_2] : memref<32x32xf32, #tpu.memory_space<vmem>>, vector<32x32xf32>
    %cst = arith.constant dense<0.000000e+00> : vector<8x32xf32>
    %2 = tpu.matmul %0, %1, %cst {dimension_numbers = #tpu.dot_dimension_numbers<[1], [0], [0], [1], [0, 0, 1, 1], [], []>} : vector<8x32xf32>, vector<32x32xf32>, vector<8x32xf32> -> vector<8x32xf32>
    %c0_3 = arith.constant 0 : index
    %c0_4 = arith.constant 0 : index
    %3 = vector.load %arg3[%c0_3, %c0_4] : memref<1x32xf32, #tpu.memory_space<vmem>>, vector<1x32xf32>
    %4 = vector.broadcast %3 : vector<1x32xf32> to vector<8x32xf32>
    %5 = arith.addf %2, %4 : vector<8x32xf32>
    %6 = arith.negf %5 : vector<8x32xf32>
    %7 = math.exp %6 : vector<8x32xf32>
    %cst_5 = arith.constant 1.000000e+00 : f32
    %8 = vector.broadcast %cst_5 : f32 to vector<8x32xf32>
    %9 = arith.addf %8, %7 : vector<8x32xf32>
    %10 = arith.divf %8, %9 : vector<8x32xf32>
    %11 = arith.mulf %0, %10 : vector<8x32xf32>
    %c0_6 = arith.constant 0 : index
    %c0_7 = arith.constant 0 : index
    %12 = vector.load %arg4[%c0_6, %c0_7] : memref<8x32xf32, #tpu.memory_space<vmem>>, vector<8x32xf32>
    tpu.vector_store %arg4[%c0_6, %c0_7], %11 {strides = array<i32>} : memref<8x32xf32, #tpu.memory_space<vmem>>, vector<8x32xf32>,
    return
  }
  func.func @transform_0(%arg0: i32) -> (i32, i32) {
    %c0_i32 = arith.constant 0 : i32
    %c0_i32_0 = arith.constant 0 : i32
    return %arg0, %c0_i32 : i32, i32
  }
  func.func @transform_1(%arg0: i32) -> (i32, i32) {
    %c0_i32 = arith.constant 0 : i32
    %c0_i32_0 = arith.constant 0 : i32
    %c0_i32_1 = arith.constant 0 : i32
    return %c0_i32, %c0_i32_0 : i32, i32
  }
  func.func @transform_2(%arg0: i32) -> (i32, i32) {
    %c0_i32 = arith.constant 0 : i32
    %c0_i32_0 = arith.constant 0 : i32
    %c0_i32_1 = arith.constant 0 : i32
    return %c0_i32, %c0_i32_0 : i32, i32
  }
  func.func @transform_3(%arg0: i32) -> (i32, i32) {
    %c0_i32 = arith.constant 0 : i32
    %c0_i32_0 = arith.constant 0 : i32
    return %arg0, %c0_i32 : i32, i32
  }
}

</mosaic_0001>

<bundles_post_ra>
// kernel: tpu_custom_call.1
= control target key start
LH: loop header
LB: loop body
LE: loop exit
PB: predicated region body
PF: predicated region fallthrough
CT: control target
= control target key end

     0   :  { %8 = vsyncpa [#allocation3], 0  ;;  %s336_s0 = inlined_call_operand.hbm [shape: f32[8,32], index: 0, kind: input, shape index: {}]   ;;  %s337_s1 = inlined_call_operand.hbm [shape: f32[32,32], index: 1, kind: input, shape index: {}]   ;;  %s338_s2 = inlined_call_operand.vmem [shape: f32[1,32], index: 2, kind: input, shape index: {}]   ;;  %s339_s3 = inlined_call_operand.hbm [shape: f32[8,32], index: 3, kind: output, shape index: {}]  }
   0x1   :  { %9 = vsyncpa [#allocation6], 0 }
   0x2   :  { %10 = vsyncpa [#allocation4], 0  ;;  %s260_s12 = smov [#allocation2]   ;;  %s261_s14 = smov [#allocation5]  }
   0x3   :  { %s17_s13 = sshll.u32 %s260_s12, 4  ;;  %s26_s15 = sshll.u32 %s261_s14, 4  ;;  %s18_s13 = int_to_ptr.vmem [resolvable:$true] %s17_s13  ;;  %s288_s15 = int_to_ptr.vmem [resolvable:$true] %s26_s15 }
   0x4   :  { %s188_s18 = scalar_lea.hbm %s336_s0, 128 }
   0x5   :  { %p189_p0 = scmp.ne.s32.totalorder %s336_s0, %s188_s18  ;;  %p192_p1 = scmp.lt.u32.totalorder %s188_s18, %s336_s0 }
   0x7   :  { %p194_p2 = pnand %p192_p1, %p189_p0 }
   0x9   :  { %197 = shalt.err (!%p194_p2)
}
   0xa   :  { %s198_s23 = scalar_lea.vmem %s18_s13, 128  ;;  %p203_p4 = scmp.lt.s32.totalorder %s18_s13, %s18_s13 }
   0xb   :  { %p199_p3 = scmp.ne.s32.totalorder %s18_s13, %s198_s23  ;;  %p204_p5 = scmp.lt.s32.totalorder %s198_s23, %s198_s23 }
   0xd   :  { %p205_p6 = por %p204_p5, %p203_p4 }
   0xf   :  { %p206_p7 = pnand %p205_p6, %p199_p3 }
  0x11   :  { %209 = shalt.err (!%p206_p7)
}
  0x12   :  { %20 = dma.hbm_to_vmem [thread:$0]  %s336_s0, 128, %s18_s13, [#allocation3]  }
  0x13   :  { %s210_s28 = scalar_lea.hbm %s337_s1, 512 }
  0x14   :  { %p211_p8 = scmp.ne.s32.totalorder %s337_s1, %s210_s28  ;;  %p214_p9 = scmp.lt.u32.totalorder %s210_s28, %s337_s1 }
  0x16   :  { %p216_p10 = pnand %p214_p9, %p211_p8 }
  0x18   :  { %219 = shalt.err (!%p216_p10)
}
  0x19   :  { %s220_s6 = scalar_lea.vmem %s288_s15, 512  ;;  %p225_p12 = scmp.lt.s32.totalorder %s288_s15, %s288_s15 }
  0x1a   :  { %p221_p11 = scmp.ne.s32.totalorder %s288_s15, %s220_s6  ;;  %p226_p13 = scmp.lt.s32.totalorder %s220_s6, %s220_s6 }
  0x1c   :  { %p227_p0 = por %p226_p13, %p225_p12 }
  0x1e   :  { %p228_p1 = pnand %p227_p0, %p221_p11 }
  0x20   :  { %231 = shalt.err (!%p228_p1)
}
  0x21   :  { %s262_s0 = smov 128   ;;  %s263_s7 = smov 8  }
  0x22   :  { %32 = dma.hbm_to_vmem [thread:$0]  %s337_s1, 512, %s288_s15, [#allocation6], %s262_s0, %s262_s0, %s263_s7  }
  0x23   :  { %254 = dma.done.wait [#allocation3], 128  }
  0x24   :  { %255 = vsyncadd [#allocation3], 4294967168 }
  0x25   :  { %256 = dma.done.wait [#allocation6], 512  }
  0x26   :  { %257 = vsyncadd [#allocation6], 4294966784  ;;  %v264_v0 = vmov 0.0|0.0   ;;  %vm265_vm0 = vmmov 0   ;;  %v266_v1 = vmov 0.0   ;;  %v42_v2 = vld [vmem:[#allocation5] sm:$0xff] }
  0x27   :  { %170 = vmatprep.subr.bf16.mxu0 %v264_v0  ;;  %167 = vmatprep.mubr.msk.f32.mxu0 %vm265_vm0, %v266_v1  ;;  %v43_v3 = vld [vmem:[#allocation5 + $0x8] sm:$0xff]  ;;  %v44_v4 = vld [vmem:[#allocation5 + $0x10] sm:$0xff]  ;;  %v45_v6 = vld [vmem:[#allocation5 + $0x18] sm:$0xff]  ;;  %vm53_vm1 = vcmask 261120   ;;  %s267_s11 = smov [#allocation7]  }
  0x28   :  { %v171_v5 = vpack.c.bf16 %v43_v3, %v42_v2  ;;  %v174_v7 = vpack.c.bf16 %v45_v6, %v44_v4  ;;  %v41_v8 = vld [vmem:[#allocation2] sm:$0xff]  ;;  %s141_s12 = sshll.u32 %s267_s11, 4  ;;  %s142_s12 = int_to_ptr.vmem [resolvable:$true] %s141_s12 }
  0x29   :  { %v151_v9 = vld [vmem:[%s338_s2] ss:$0 sm:$0xff]  ;;  %s232_s13 = scalar_lea.vmem %s142_s12, 128  ;;  %p237_p3 = scmp.lt.s32.totalorder %s142_s12, %s142_s12 }
  0x2a   :  { %172 = vmatpush3.bf16.msra.mxu0 %v171_v5  ;;  %p233_p2 = scmp.ne.s32.totalorder %s142_s12, %s232_s13  ;;  %p238_p4 = scmp.lt.s32.totalorder %s232_s13, %s232_s13 }
  0x2b   :  { %173 = vmatprep.subr.bf16.mxu0 %v264_v0 }
  0x2c   :  { %p239_p5 = por %p238_p4, %p237_p3 }
  0x2e   :  { %175 = vmatpush3.bf16.msra.mxu0 %v174_v7  ;;  %p240_p6 = pnand %p239_p5, %p233_p2 }
  0x31   :  { %168 = vmatmul.mubr.msk.f32.vlgmr.msra.gmra.mrb[0].mxu0 %vm53_vm1, %v41_v8 }
 0x104   :  { %v123_v10 = vpop.f32.mrb[0].mxu0 }
 0x105   :  { %v124_v11 = vadd.f32 %v151_v9, %v123_v10  ;;  %v169_v12 = vpop.f32.mrb[1].mxu0 }
 0x107   :  { %v153_v13 = vmul.f32 -1.442695, %v124_v11 }
 0x109   :  { %184 = vpow2.f32 %v153_v13 }
 0x113   :  { %v185_v14 = vpop.eup %184 }
 0x114   :  { %v130_v15 = vadd.f32 1.0, %v185_v14 }
 0x116   :  { %186 = vrcp.f32 %v130_v15 }
 0x120   :  { %v187_v16 = vpop.eup %186 }
 0x121   :  { %v133_v17 = vmul.f32 %v187_v16, %v41_v8 }
 0x123   :  { %134 = vst.msk [vmem:[#allocation7] sm:$0xff] %vm53_vm1, %v133_v17 }
 0x124   :  { %243 = shalt.err (!%p240_p6)
}
 0x125   :  { %s244_s15 = scalar_lea.hbm %s339_s3, 128 }
 0x126   :  { %p245_p7 = scmp.ne.s32.totalorder %s339_s3, %s244_s15  ;;  %p248_p8 = scmp.lt.u32.totalorder %s244_s15, %s339_s3 }
 0x128   :  { %p250_p9 = pnand %p248_p8, %p245_p7 }
 0x12a   :  { %253 = shalt.err (!%p250_p9)
}
 0x12b   :  { %144 = dma.vmem_to_hbm [thread:$0]  %s142_s12, 128, %s339_s3, [#allocation4]  }
 0x12c   :  { %258 = dma.done.wait [#allocation4], 128  }
 0x12d   :  { %259 = vsyncadd [#allocation4], 4294967168 }
 0x12e   :  { %148 = vsyncpa [#allocation3], 1 }
 0x12f   :  { %149 = vsyncpa [#allocation6], 1 }
 0x130   :  { %150 = vsyncpa [#allocation4], 1 }

// kernel: tpu_custom_call.1
= control target key start
LH: loop header
LB: loop body
LE: loop exit
PB: predicated region body
PF: predicated region fallthrough
CT: control target
= control target key end

     0   :  { %8 = vsyncpa [#allocation3], 0  ;;  %s336_s0 = inlined_call_operand.hbm [shape: f32[8,32], index: 0, kind: input, shape index: {}]   ;;  %s337_s1 = inlined_call_operand.hbm [shape: f32[32,32], index: 1, kind: input, shape index: {}]   ;;  %s338_s2 = inlined_call_operand.vmem [shape: f32[1,32], index: 2, kind: input, shape index: {}]   ;;  %s339_s3 = inlined_call_operand.hbm [shape: f32[8,32], index: 3, kind: output, shape index: {}]  }
   0x1   :  { %9 = vsyncpa [#allocation6], 0 }
   0x2   :  { %10 = vsyncpa [#allocation4], 0  ;;  %s260_s12 = smov [#allocation2]   ;;  %s261_s14 = smov [#allocation5]  }
   0x3   :  { %s17_s13 = sshll.u32 %s260_s12, 4  ;;  %s26_s15 = sshll.u32 %s261_s14, 4  ;;  %s18_s13 = int_to_ptr.vmem [resolvable:$true] %s17_s13  ;;  %s288_s15 = int_to_ptr.vmem [resolvable:$true] %s26_s15 }
   0x4   :  { %s188_s18 = scalar_lea.hbm %s336_s0, 128 }
   0x5   :  { %p189_p0 = scmp.ne.s32.totalorder %s336_s0, %s188_s18  ;;  %p192_p1 = scmp.lt.u32.totalorder %s188_s18, %s336_s0 }
   0x7   :  { %p194_p2 = pnand %p192_p1, %p189_p0 }
   0x9   :  { %197 = shalt.err (!%p194_p2)
}
   0xa   :  { %s198_s23 = scalar_lea.vmem %s18_s13, 128  ;;  %p203_p4 = scmp.lt.s32.totalorder %s18_s13, %s18_s13 }
   0xb   :  { %p199_p3 = scmp.ne.s32.totalorder %s18_s13, %s198_s23  ;;  %p204_p5 = scmp.lt.s32.totalorder %s198_s23, %s198_s23 }
   0xd   :  { %p205_p6 = por %p204_p5, %p203_p4 }
   0xf   :  { %p206_p7 = pnand %p205_p6, %p199_p3 }
  0x11   :  { %209 = shalt.err (!%p206_p7)
}
  0x12   :  { %20 = dma.hbm_to_vmem [thread:$0]  %s336_s0, 128, %s18_s13, [#allocation3]  }
  0x13   :  { %s210_s28 = scalar_lea.hbm %s337_s1, 512 }
  0x14   :  { %p211_p8 = scmp.ne.s32.totalorder %s337_s1, %s210_s28  ;;  %p214_p9 = scmp.lt.u32.totalorder %s210_s28, %s337_s1 }
  0x16   :  { %p216_p10 = pnand %p214_p9, %p211_p8 }
  0x18   :  { %219 = shalt.err (!%p216_p10)
}
  0x19   :  { %s220_s6 = scalar_lea.vmem %s288_s15, 512  ;;  %p225_p12 = scmp.lt.s32.totalorder %s288_s15, %s288_s15 }
  0x1a   :  { %p221_p11 = scmp.ne.s32.totalorder %s288_s15, %s220_s6  ;;  %p226_p13 = scmp.lt.s32.totalorder %s220_s6, %s220_s6 }
  0x1c   :  { %p227_p0 = por %p226_p13, %p225_p12 }
  0x1e   :  { %p228_p1 = pnand %p227_p0, %p221_p11 }
  0x20   :  { %231 = shalt.err (!%p228_p1)
}
  0x21   :  { %s262_s0 = smov 128   ;;  %s263_s7 = smov 8  }
  0x22   :  { %32 = dma.hbm_to_vmem [thread:$0]  %s337_s1, 512, %s288_s15, [#allocation6], %s262_s0, %s262_s0, %s263_s7  }
  0x23   :  { %254 = dma.done.wait [#allocation3], 128  }
  0x24   :  { %255 = vsyncadd [#allocation3], 4294967168 }
  0x25   :  { %256 = dma.done.wait [#allocation6], 512  }
  0x26   :  { %257 = vsyncadd [#allocation6], 4294966784  ;;  %v264_v0 = vmov 0.0|0.0   ;;  %vm265_vm0 = vmmov 0   ;;  %v266_v1 = vmov 0.0   ;;  %v42_v2 = vld [vmem:[#allocation5] sm:$0xff] }
  0x27   :  { %170 = vmatprep.subr.bf16.mxu0 %v264_v0  ;;  %167 = vmatprep.mubr.msk.f32.mxu0 %vm265_vm0, %v266_v1  ;;  %v43_v3 = vld [vmem:[#allocation5 + $0x8] sm:$0xff]  ;;  %v44_v4 = vld [vmem:[#allocation5 + $0x10] sm:$0xff]  ;;  %v45_v6 = vld [vmem:[#allocation5 + $0x18] sm:$0xff]  ;;  %vm53_vm1 = vcmask 261120   ;;  %s267_s11 = smov [#allocation7]  }
  0x28   :  { %v171_v5 = vpack.c.bf16 %v43_v3, %v42_v2  ;;  %v174_v7 = vpack.c.bf16 %v45_v6, %v44_v4  ;;  %v41_v8 = vld [vmem:[#allocation2] sm:$0xff]  ;;  %s141_s12 = sshll.u32 %s267_s11, 4  ;;  %s142_s12 = int_to_ptr.vmem [resolvable:$true] %s141_s12 }
  0x29   :  { %v151_v9 = vld [vmem:[%s338_s2] ss:$0 sm:$0xff]  ;;  %s232_s13 = scalar_lea.vmem %s142_s12, 128  ;;  %p237_p3 = scmp.lt.s32.totalorder %s142_s12, %s142_s12 }
  0x2a   :  { %172 = vmatpush3.bf16.msra.mxu0 %v171_v5  ;;  %p233_p2 = scmp.ne.s32.totalorder %s142_s12, %s232_s13  ;;  %p238_p4 = scmp.lt.s32.totalorder %s232_s13, %s232_s13 }
  0x2b   :  { %173 = vmatprep.subr.bf16.mxu0 %v264_v0 }
  0x2c   :  { %p239_p5 = por %p238_p4, %p237_p3 }
  0x2e   :  { %175 = vmatpush3.bf16.msra.mxu0 %v174_v7  ;;  %p240_p6 = pnand %p239_p5, %p233_p2 }
  0x31   :  { %168 = vmatmul.mubr.msk.f32.vlgmr.msra.gmra.mrb[0].mxu0 %vm53_vm1, %v41_v8 }
 0x104   :  { %v123_v10 = vpop.f32.mrb[0].mxu0 }
 0x105   :  { %v124_v11 = vadd.f32 %v151_v9, %v123_v10  ;;  %v169_v12 = vpop.f32.mrb[1].mxu0 }
 0x107   :  { %v153_v13 = vmul.f32 -1.442695, %v124_v11 }
 0x109   :  { %184 = vpow2.f32 %v153_v13 }
 0x113   :  { %v185_v14 = vpop.eup %184 }
 0x114   :  { %v130_v15 = vadd.f32 1.0, %v185_v14 }
 0x116   :  { %186 = vrcp.f32 %v130_v15 }
 0x120   :  { %v187_v16 = vpop.eup %186 }
 0x121   :  { %v133_v17 = vmul.f32 %v187_v16, %v41_v8 }
 0x123   :  { %134 = vst.msk [vmem:[#allocation7] sm:$0xff] %vm53_vm1, %v133_v17 }
 0x124   :  { %243 = shalt.err (!%p240_p6)
}
 0x125   :  { %s244_s15 = scalar_lea.hbm %s339_s3, 128 }
 0x126   :  { %p245_p7 = scmp.ne.s32.totalorder %s339_s3, %s244_s15  ;;  %p248_p8 = scmp.lt.u32.totalorder %s244_s15, %s339_s3 }
 0x128   :  { %p250_p9 = pnand %p248_p8, %p245_p7 }
 0x12a   :  { %253 = shalt.err (!%p250_p9)
}
 0x12b   :  { %144 = dma.vmem_to_hbm [thread:$0]  %s142_s12, 128, %s339_s3, [#allocation4]  }
 0x12c   :  { %258 = dma.done.wait [#allocation4], 128  }
 0x12d   :  { %259 = vsyncadd [#allocation4], 4294967168 }
 0x12e   :  { %148 = vsyncpa [#allocation3], 1 }
 0x12f   :  { %149 = vsyncpa [#allocation6], 1 }
 0x130   :  { %150 = vsyncpa [#allocation4], 1 }

</bundles_post_ra>
